<compile_context>
chip_gen: v7x
topology: tpu7x:2x2x1
jax: 0.10.0
libtpu: 0.0.40
codegen_flags: <defaults>
</compile_context>

<pallas_src>
import jax
import jax.numpy as jnp
from jax.experimental import pallas as pl
from jax.experimental.pallas import tpu as pltpu

# Layer sizes of the nn.Sequential
DIMS = [1, 128, 64, 32, 8, 1]
TB = 8192                       # batch tile (lanes per grid step); multiple of 128
MATMUL_DTYPE = jnp.bfloat16     # operand dtype for the layer-2/3/4 MXU matmuls


def _round_up(x, m):
    return ((x + m - 1) // m) * m


def mlp_kernel(x_ref,
               w1_ref, b1_ref,
               w2_ref, b2_ref,
               w3_ref, b3_ref,
               w4_ref, b4_ref,
               w5_ref, b5_ref,
               o_ref):
    # x tile: (1, TB) f32 -- batch along lanes.
    x = x_ref[...]

    # Layer 1 (1 -> 128): K == 1 is a degenerate matmul; VPU broadcast FMA.
    #   (128, 1) * (1, TB) + (128, 1) -> (128, TB)
    h = jnp.maximum(w1_ref[...] * x + b1_ref[...], 0.0)

    # Layers 2-4: W @ h on the MXU, bf16 (or f32) operands, f32 accumulation.
    w2 = w2_ref[...]
    h = jnp.maximum(
        jnp.dot(w2, h.astype(w2.dtype), preferred_element_type=jnp.float32)
        + b2_ref[...], 0.0)
    w3 = w3_ref[...]
    h = jnp.maximum(
        jnp.dot(w3, h.astype(w3.dtype), preferred_element_type=jnp.float32)
        + b3_ref[...], 0.0)
    w4 = w4_ref[...]
    h = jnp.maximum(
        jnp.dot(w4, h.astype(w4.dtype), preferred_element_type=jnp.float32)
        + b4_ref[...], 0.0)

    # Layer 5 (8 -> 1): tiny contraction -> VPU multiply + sublane reduce, writing
    # a lane-dense (1, TB) output row.
    y = jnp.sum(h * w5_ref[...], axis=0, keepdims=True) + b5_ref[...]
    o_ref[...] = y.astype(o_ref.dtype)


def init_params(key):
    """PyTorch-default-style init: U(-1/sqrt(fan_in), 1/sqrt(fan_in)) for W and b.

    Weights 1..4 are kept in torch (out_features, in_features) layout so the kernel
    computes W @ h with the batch in lanes; the last weight is stored pre-transposed
    as (in_features, out_features) = (8, 1) for the VPU reduce.  Biases are stored
    as (out_features, 1) columns (broadcast across lanes).  All f32.
    """
    params = []
    for i in range(len(DIMS) - 1):
        fan_in, fan_out = DIMS[i], DIMS[i + 1]
        key, kw, kb = jax.random.split(key, 3)
        bound = 1.0 / (fan_in ** 0.5)
        w = jax.random.uniform(kw, (fan_out, fan_in), jnp.float32, -bound, bound)
        b = jax.random.uniform(kb, (fan_out, 1), jnp.float32, -bound, bound)
        params.append((w, b))
    w5, b5 = params[-1]
    params[-1] = (w5.T, b5)  # (8, 1), (1, 1)
    return params


def _cast_mid_weights(params, dtype):
    """Cast the layer-2/3/4 weights (MXU operands) to `dtype`; everything else f32."""
    out = list(params)
    for i in (1, 2, 3):
        w, b = out[i]
        out[i] = (w.astype(dtype), b)
    return out


def mlp_forward(x, params, tb=TB, matmul_dtype=MATMUL_DTYPE):
    B = x.shape[0]
    params = _cast_mid_weights(params, matmul_dtype)

    # Shrink the tile for small batches; keep it a multiple of 128 lanes.
    tb = max(128, min(tb, _round_up(B, 128)))
    n_tiles = pl.cdiv(B, tb)

    # Present the batch along the lane axis: (B, 1) -> (1, B).  No padding:
    # Pallas handles the partial last block and masks its writeback.
    x_row = x.reshape(1, B).astype(jnp.float32)

    flat_args = [x_row]
    in_specs = [pl.BlockSpec((1, tb), lambda i: (0, i))]
    for w, b in params:
        flat_args += [w, b]
        # Constant index_map: parameters are fetched once and stay VMEM-resident.
        in_specs += [
            pl.BlockSpec(w.shape, lambda i: (0, 0)),
            pl.BlockSpec(b.shape, lambda i: (0, 0)),
        ]

    out_row = pl.pallas_call(
        mlp_kernel,
        out_shape=jax.ShapeDtypeStruct((1, B), jnp.float32),
        grid_spec=pltpu.PrefetchScalarGridSpec(
            num_scalar_prefetch=0,
            grid=(n_tiles,),
            in_specs=in_specs,
            out_specs=pl.BlockSpec((1, tb), lambda i: (0, i)),
        ),
        compiler_params=pltpu.CompilerParams(
            dimension_semantics=("parallel",),
            # 32 MiB scoped VMEM: headroom for TB=8192 f32 activations on every
            # generation (well below v7x's 64 MiB physical).
            vmem_limit_bytes=32 * 1024 * 1024,
        ),
    )(*flat_args)

    # Back to the module's (B, 1) layout.
    return out_row.reshape(B, 1)


def mlp_forward_ref(x, params, matmul_dtype=MATMUL_DTYPE):
    """Plain-JAX reference matching torch.nn.Linear semantics (y = x @ W.T + b),
    with the same bf16-operand / f32-accumulate casts as the kernel."""
    params = _cast_mid_weights(params, matmul_dtype)
    (w1, b1), (w2, b2), (w3, b3), (w4, b4), (w5, b5) = params
    h = x.astype(jnp.float32)
    h = jnp.maximum(h @ w1.T + b1.reshape(1, -1), 0.0)
    for w, b in ((w2, b2), (w3, b3), (w4, b4)):
        hw = jnp.dot(h.astype(w.dtype), w.T, preferred_element_type=jnp.float32)
        h = jnp.maximum(hw + b.reshape(1, -1), 0.0)
    return h @ w5 + b5.reshape(1, -1)   # last weight stored pre-transposed (8, 1)


if __name__ == "__main__":
    key = jax.random.PRNGKey(0)
    key, kx = jax.random.split(key)

    B = 8  # small batch
    x = jax.random.uniform(kx, (B, 1), jnp.float32, -5.0, 5.0)

    params = init_params(key)

    out = jax.block_until_ready(mlp_forward(x, params))
    ref = mlp_forward_ref(x, params)

    assert out.shape == (B, 1)
    err = float(jnp.max(jnp.abs(out - ref)))
    assert jnp.allclose(out, ref, atol=2e-3, rtol=2e-3), err

    print("KERNEL_OK")
</pallas_src>

<mosaic_0001>
module attributes {stable_mosaic.version = 11 : i64} {
  func.func @mlp_kernel(%arg0: i32, %arg1: memref<1x128xf32, #tpu.memory_space<vmem>>, %arg2: memref<128x1xf32, #tpu.memory_space<vmem>>, %arg3: memref<128x1xf32, #tpu.memory_space<vmem>>, %arg4: memref<64x128xbf16, #tpu.memory_space<vmem>>, %arg5: memref<64x1xf32, #tpu.memory_space<vmem>>, %arg6: memref<32x64xbf16, #tpu.memory_space<vmem>>, %arg7: memref<32x1xf32, #tpu.memory_space<vmem>>, %arg8: memref<8x32xbf16, #tpu.memory_space<vmem>>, %arg9: memref<8x1xf32, #tpu.memory_space<vmem>>, %arg10: memref<8x1xf32, #tpu.memory_space<vmem>>, %arg11: memref<1x1xf32, #tpu.memory_space<vmem>>, %arg12: memref<1x128xf32, #tpu.memory_space<vmem>>) attributes {dimension_semantics = [#tpu.dimension_semantics<parallel>], iteration_bounds = array<i64: 1>, scalar_prefetch = 0 : i64, scratch_operands = 0 : i64, tpu.core_type = #tpu.core_type<tc>, window_params = [{transform_indices = @transform_0, window_bounds = array<i64: 1, 128>}, {pipeline_mode = #tpu.pipeline_mode<synchronous>, transform_indices = @transform_1, window_bounds = array<i64: 128, 1>}, {pipeline_mode = #tpu.pipeline_mode<synchronous>, transform_indices = @transform_2, window_bounds = array<i64: 128, 1>}, {pipeline_mode = #tpu.pipeline_mode<synchronous>, transform_indices = @transform_3, window_bounds = array<i64: 64, 128>}, {pipeline_mode = #tpu.pipeline_mode<synchronous>, transform_indices = @transform_4, window_bounds = array<i64: 64, 1>}, {pipeline_mode = #tpu.pipeline_mode<synchronous>, transform_indices = @transform_5, window_bounds = array<i64: 32, 64>}, {pipeline_mode = #tpu.pipeline_mode<synchronous>, transform_indices = @transform_6, window_bounds = array<i64: 32, 1>}, {pipeline_mode = #tpu.pipeline_mode<synchronous>, transform_indices = @transform_7, window_bounds = array<i64: 8, 32>}, {pipeline_mode = #tpu.pipeline_mode<synchronous>, transform_indices = @transform_8, window_bounds = array<i64: 8, 1>}, {pipeline_mode = #tpu.pipeline_mode<synchronous>, transform_indices = @transform_9, window_bounds = array<i64: 8, 1>}, {pipeline_mode = #tpu.pipeline_mode<synchronous>, transform_indices = @transform_10, window_bounds = array<i64: 1, 1>}, {transform_indices = @transform_11, window_bounds = array<i64: 1, 128>}]} {
    %c0 = arith.constant 0 : index
    %c0_0 = arith.constant 0 : index
    %0 = vector.load %arg1[%c0, %c0_0] : memref<1x128xf32, #tpu.memory_space<vmem>>, vector<1x128xf32>
    %c0_1 = arith.constant 0 : index
    %c0_2 = arith.constant 0 : index
    %1 = vector.load %arg2[%c0_1, %c0_2] : memref<128x1xf32, #tpu.memory_space<vmem>>, vector<128x1xf32>
    %2 = vector.broadcast %1 : vector<128x1xf32> to vector<128x128xf32>
    %3 = vector.broadcast %0 : vector<1x128xf32> to vector<128x128xf32>
    %4 = arith.mulf %2, %3 : vector<128x128xf32>
    %c0_3 = arith.constant 0 : index
    %c0_4 = arith.constant 0 : index
    %5 = vector.load %arg3[%c0_3, %c0_4] : memref<128x1xf32, #tpu.memory_space<vmem>>, vector<128x1xf32>
    %6 = vector.broadcast %5 : vector<128x1xf32> to vector<128x128xf32>
    %7 = arith.addf %4, %6 : vector<128x128xf32>
    %cst = arith.constant 0.000000e+00 : f32
    %8 = vector.broadcast %cst : f32 to vector<128x128xf32>
    %9 = arith.maximumf %7, %8 : vector<128x128xf32>
    %c0_5 = arith.constant 0 : index
    %c0_6 = arith.constant 0 : index
    %10 = vector.load %arg4[%c0_5, %c0_6] : memref<64x128xbf16, #tpu.memory_space<vmem>>, vector<64x128xbf16>
    %11 = arith.truncf %9 : vector<128x128xf32> to vector<128x128xbf16>
    %cst_7 = arith.constant dense<0.000000e+00> : vector<64x128xf32>
    %12 = tpu.matmul %10, %11, %cst_7 {dimension_numbers = #tpu.dot_dimension_numbers<[1], [0], [0], [1], [0, 0, 1, 1], [], []>} : vector<64x128xbf16>, vector<128x128xbf16>, vector<64x128xf32> -> vector<64x128xf32>
    %c0_8 = arith.constant 0 : index
    %c0_9 = arith.constant 0 : index
    %13 = vector.load %arg5[%c0_8, %c0_9] : memref<64x1xf32, #tpu.memory_space<vmem>>, vector<64x1xf32>
    %14 = vector.broadcast %13 : vector<64x1xf32> to vector<64x128xf32>
    %15 = arith.addf %12, %14 : vector<64x128xf32>
    %cst_10 = arith.constant 0.000000e+00 : f32
    %16 = vector.broadcast %cst_10 : f32 to vector<64x128xf32>
    %17 = arith.maximumf %15, %16 : vector<64x128xf32>
    %c0_11 = arith.constant 0 : index
    %c0_12 = arith.constant 0 : index
    %18 = vector.load %arg6[%c0_11, %c0_12] : memref<32x64xbf16, #tpu.memory_space<vmem>>, vector<32x64xbf16>
    %19 = arith.truncf %17 : vector<64x128xf32> to vector<64x128xbf16>
    %cst_13 = arith.constant dense<0.000000e+00> : vector<32x128xf32>
    %20 = tpu.matmul %18, %19, %cst_13 {dimension_numbers = #tpu.dot_dimension_numbers<[1], [0], [0], [1], [0, 0, 1, 1], [], []>} : vector<32x64xbf16>, vector<64x128xbf16>, vector<32x128xf32> -> vector<32x128xf32>
    %c0_14 = arith.constant 0 : index
    %c0_15 = arith.constant 0 : index
    %21 = vector.load %arg7[%c0_14, %c0_15] : memref<32x1xf32, #tpu.memory_space<vmem>>, vector<32x1xf32>
    %22 = vector.broadcast %21 : vector<32x1xf32> to vector<32x128xf32>
    %23 = arith.addf %20, %22 : vector<32x128xf32>
    %cst_16 = arith.constant 0.000000e+00 : f32
    %24 = vector.broadcast %cst_16 : f32 to vector<32x128xf32>
    %25 = arith.maximumf %23, %24 : vector<32x128xf32>
    %c0_17 = arith.constant 0 : index
    %c0_18 = arith.constant 0 : index
    %26 = vector.load %arg8[%c0_17, %c0_18] : memref<8x32xbf16, #tpu.memory_space<vmem>>, vector<8x32xbf16>
    %27 = arith.truncf %25 : vector<32x128xf32> to vector<32x128xbf16>
    %cst_19 = arith.constant dense<0.000000e+00> : vector<8x128xf32>
    %28 = tpu.matmul %26, %27, %cst_19 {dimension_numbers = #tpu.dot_dimension_numbers<[1], [0], [0], [1], [0, 0, 1, 1], [], []>} : vector<8x32xbf16>, vector<32x128xbf16>, vector<8x128xf32> -> vector<8x128xf32>
    %c0_20 = arith.constant 0 : index
    %c0_21 = arith.constant 0 : index
    %29 = vector.load %arg9[%c0_20, %c0_21] : memref<8x1xf32, #tpu.memory_space<vmem>>, vector<8x1xf32>
    %30 = vector.broadcast %29 : vector<8x1xf32> to vector<8x128xf32>
    %31 = arith.addf %28, %30 : vector<8x128xf32>
    %cst_22 = arith.constant 0.000000e+00 : f32
    %32 = vector.broadcast %cst_22 : f32 to vector<8x128xf32>
    %33 = arith.maximumf %31, %32 : vector<8x128xf32>
    %c0_23 = arith.constant 0 : index
    %c0_24 = arith.constant 0 : index
    %34 = vector.load %arg10[%c0_23, %c0_24] : memref<8x1xf32, #tpu.memory_space<vmem>>, vector<8x1xf32>
    %35 = vector.broadcast %34 : vector<8x1xf32> to vector<8x128xf32>
    %36 = arith.mulf %33, %35 : vector<8x128xf32>
    %cst_25 = arith.constant dense<0.000000e+00> : vector<128xf32>
    %37 = vector.multi_reduction <add>, %36, %cst_25 [0] : vector<8x128xf32> to vector<128xf32>
    %38 = vector.shape_cast %37 : vector<128xf32> to vector<1x128xf32>
    %c0_26 = arith.constant 0 : index
    %c0_27 = arith.constant 0 : index
    %39 = vector.load %arg11[%c0_26, %c0_27] : memref<1x1xf32, #tpu.memory_space<vmem>>, vector<1x1xf32>
    %40 = vector.broadcast %39 : vector<1x1xf32> to vector<1x128xf32>
    %41 = arith.addf %38, %40 : vector<1x128xf32>
    %c0_28 = arith.constant 0 : index
    %c0_29 = arith.constant 0 : index
    %42 = vector.load %arg12[%c0_28, %c0_29] : memref<1x128xf32, #tpu.memory_space<vmem>>, vector<1x128xf32>
    tpu.vector_store %arg12[%c0_28, %c0_29], %41 {strides = array<i32>} : memref<1x128xf32, #tpu.memory_space<vmem>>, vector<1x128xf32>,
    return
  }
  func.func @transform_0(%arg0: i32) -> (i32, i32) {
    %c0_i32 = arith.constant 0 : i32
    %c0_i32_0 = arith.constant 0 : i32
    return %c0_i32, %arg0 : i32, i32
  }
  func.func @transform_1(%arg0: i32) -> (i32, i32) {
    %c0_i32 = arith.constant 0 : i32
    %c0_i32_0 = arith.constant 0 : i32
    %c0_i32_1 = arith.constant 0 : i32
    return %c0_i32, %c0_i32_0 : i32, i32
  }
  func.func @transform_2(%arg0: i32) -> (i32, i32) {
    %c0_i32 = arith.constant 0 : i32
    %c0_i32_0 = arith.constant 0 : i32
    %c0_i32_1 = arith.constant 0 : i32
    return %c0_i32, %c0_i32_0 : i32, i32
  }
  func.func @transform_3(%arg0: i32) -> (i32, i32) {
    %c0_i32 = arith.constant 0 : i32
    %c0_i32_0 = arith.constant 0 : i32
    %c0_i32_1 = arith.constant 0 : i32
    return %c0_i32, %c0_i32_0 : i32, i32
  }
  func.func @transform_4(%arg0: i32) -> (i32, i32) {
    %c0_i32 = arith.constant 0 : i32
    %c0_i32_0 = arith.constant 0 : i32
    %c0_i32_1 = arith.constant 0 : i32
    return %c0_i32, %c0_i32_0 : i32, i32
  }
  func.func @transform_5(%arg0: i32) -> (i32, i32) {
    %c0_i32 = arith.constant 0 : i32
    %c0_i32_0 = arith.constant 0 : i32
    %c0_i32_1 = arith.constant 0 : i32
    return %c0_i32, %c0_i32_0 : i32, i32
  }
  func.func @transform_6(%arg0: i32) -> (i32, i32) {
    %c0_i32 = arith.constant 0 : i32
    %c0_i32_0 = arith.constant 0 : i32
    %c0_i32_1 = arith.constant 0 : i32
    return %c0_i32, %c0_i32_0 : i32, i32
  }
  func.func @transform_7(%arg0: i32) -> (i32, i32) {
    %c0_i32 = arith.constant 0 : i32
    %c0_i32_0 = arith.constant 0 : i32
    %c0_i32_1 = arith.constant 0 : i32
    return %c0_i32, %c0_i32_0 : i32, i32
  }
  func.func @transform_8(%arg0: i32) -> (i32, i32) {
    %c0_i32 = arith.constant 0 : i32
    %c0_i32_0 = arith.constant 0 : i32
    %c0_i32_1 = arith.constant 0 : i32
    return %c0_i32, %c0_i32_0 : i32, i32
  }
  func.func @transform_9(%arg0: i32) -> (i32, i32) {
    %c0_i32 = arith.constant 0 : i32
    %c0_i32_0 = arith.constant 0 : i32
    %c0_i32_1 = arith.constant 0 : i32
    return %c0_i32, %c0_i32_0 : i32, i32
  }
  func.func @transform_10(%arg0: i32) -> (i32, i32) {
    %c0_i32 = arith.constant 0 : i32
    %c0_i32_0 = arith.constant 0 : i32
    %c0_i32_1 = arith.constant 0 : i32
    return %c0_i32, %c0_i32_0 : i32, i32
  }
  func.func @transform_11(%arg0: i32) -> (i32, i32) {
    %c0_i32 = arith.constant 0 : i32
    %c0_i32_0 = arith.constant 0 : i32
    return %c0_i32, %arg0 : i32, i32
  }
}

</mosaic_0001>

<bundles_post_ra>
// kernel: tpu_custom_call.1
= control target key start
LH: loop header
LB: loop body
LE: loop exit
PB: predicated region body
PF: predicated region fallthrough
CT: control target
= control target key end

     0   :  { %s1017_s0 = inlined_call_operand.vmem [shape: f32[1,8], index: 0, kind: input, shape index: {}]   ;;  %s1018_s1 = inlined_call_operand.vmem [shape: f32[128,1], index: 1, kind: input, shape index: {}]   ;;  %s1019_s2 = inlined_call_operand.vmem [shape: f32[128,1], index: 2, kind: input, shape index: {}]   ;;  %s1020_s3 = inlined_call_operand.vmem [shape: bf16[64,128], index: 3, kind: input, shape index: {}]   ;;  %s1021_s4 = inlined_call_operand.vmem [shape: f32[64,1], index: 4, kind: input, shape index: {}]   ;;  %s1022_s5 = inlined_call_operand.vmem [shape: bf16[32,64], index: 5, kind: input, shape index: {}]   ;;  %s1023_s6 = inlined_call_operand.vmem [shape: f32[32,1], index: 6, kind: input, shape index: {}]   ;;  %s1024_s7 = inlined_call_operand.vmem [shape: bf16[8,32], index: 7, kind: input, shape index: {}]   ;;  %s1025_s8 = inlined_call_operand.vmem [shape: f32[8,1], index: 8, kind: input, shape index: {}]   ;;  %s1026_s9 = inlined_call_operand.vmem [shape: f32[8,1], index: 9, kind: input, shape index: {}]   ;;  %s1027_s10 = inlined_call_operand.<no memory space> [shape: f32[1,1], index: 10, kind: input, shape index: {}]   ;;  %s1028_s11 = inlined_call_operand.hbm [shape: f32[1,8], index: 11, kind: output, shape index: {}]  }
   0x1   :  { %v16_v0 = vstv %s1027_s10 }
   0x2   :  { %17 = vst [vmem:[#allocation2] sm:$0x1] %v16_v0 }
   0x3   :  { %v161_v1 = vld [vmem:[%s1019_s2] sm:$0xff]  ;;  %v756_v3 = vmov 0   ;;  %v162_v4 = vld [vmem:[%s1019_s2 + $0x8] sm:$0xff]  ;;  %v46_v6 = vld [vmem:[%s1018_s1 + $0x18] sm:$0xff] }
   0x4   :  { %v43_v2 = vld [vmem:[%s1018_s1] sm:$0xff]  ;;  %725 = vset.pattern.permute.xlu1 %v756_v3  ;;  %724 = vset.pattern.permute.xlu0 %v756_v3  ;;  %v44_v5 = vld [vmem:[%s1018_s1 + $0x8] sm:$0xff]  ;;  %v45_v7 = vld [vmem:[%s1018_s1 + $0x10] sm:$0xff] }
   0x5   :  { %179 = vperm.xlu1 %725, %v161_v1   ;;  %61 = vperm.xlu0 %724, %v43_v2   ;;  %v164_v8 = vld [vmem:[%s1019_s2 + $0x18] sm:$0xff]  ;;  %v163_v9 = vld [vmem:[%s1019_s2 + $0x10] sm:$0xff]  ;;  %v48_v10 = vld [vmem:[%s1018_s1 + $0x28] sm:$0xff] }
   0x6   :  { %v47_v11 = vld [vmem:[%s1018_s1 + $0x20] sm:$0xff]  ;;  %v166_v12 = vld [vmem:[%s1019_s2 + $0x28] sm:$0xff] }
   0x7   :  { %v165_v13 = vld [vmem:[%s1019_s2 + $0x20] sm:$0xff] }
   0x9   :  { %184 = vperm.xlu1 %725, %v162_v4   ;;  %66 = vperm.xlu0 %724, %v44_v5  }
   0xd   :  { %76 = vperm.xlu1 %725, %v46_v6   ;;  %71 = vperm.xlu0 %724, %v45_v7  }
  0x11   :  { %194 = vperm.xlu1 %725, %v164_v8   ;;  %189 = vperm.xlu0 %724, %v163_v9  }
  0x15   :  { %86 = vperm.xlu1 %725, %v48_v10   ;;  %81 = vperm.xlu0 %724, %v47_v11  }
  0x16   :  { %18 = vsyncpa [#allocation4], 0  ;;  %v50_v14 = vld [vmem:[%s1018_s1 + $0x38] sm:$0xff]  ;;  %v49_v15 = vld [vmem:[%s1018_s1 + $0x30] sm:$0xff]  ;;  %vm492_vm0 = vcmask 523264   ;;  %vm758_vm1 = vmmov 0  }
  0x17   :  { %v168_v16 = vld [vmem:[%s1019_s2 + $0x38] sm:$0xff]  ;;  %v167_v17 = vld [vmem:[%s1019_s2 + $0x30] sm:$0xff]  ;;  %v52_v18 = vld [vmem:[%s1018_s1 + $0x48] sm:$0xff]  ;;  %vm561_vm2 = vcmask 261120  }
  0x18   :  { %v51_v19 = vld [vmem:[%s1018_s1 + $0x40] sm:$0xff]  ;;  %v170_v20 = vld [vmem:[%s1019_s2 + $0x48] sm:$0xff]  ;;  %v54_v22 = vld [vmem:[%s1018_s1 + $0x58] sm:$0xff] }
  0x19   :  { %204 = vperm.xlu1 %725, %v166_v12   ;;  %199 = vperm.xlu0 %724, %v165_v13   ;;  %v169_v21 = vld [vmem:[%s1019_s2 + $0x40] sm:$0xff]  ;;  %v53_v23 = vld [vmem:[%s1018_s1 + $0x50] sm:$0xff]  ;;  %v172_v24 = vld [vmem:[%s1019_s2 + $0x58] sm:$0xff] }
  0x1a   :  { %v171_v25 = vld [vmem:[%s1019_s2 + $0x50] sm:$0xff]  ;;  %v56_v26 = vld [vmem:[%s1018_s1 + $0x68] sm:$0xff]  ;;  %v55_v27 = vld [vmem:[%s1018_s1 + $0x60] sm:$0xff] }
  0x1b   :  { %v174_v28 = vld [vmem:[%s1019_s2 + $0x68] sm:$0xff]  ;;  %v173_v29 = vld [vmem:[%s1019_s2 + $0x60] sm:$0xff]  ;;  %v58_v30 = vld [vmem:[%s1018_s1 + $0x78] sm:$0xff] }
  0x1c   :  { %v57_v31 = vld [vmem:[%s1018_s1 + $0x70] sm:$0xff]  ;;  %v176_v32 = vld [vmem:[%s1019_s2 + $0x78] sm:$0xff]  ;;  %v306_v34 = vld [vmem:[%s1021_s4 + $0x8] sm:$0xff] }
  0x1d   :  { %96 = vperm.xlu1 %725, %v50_v14   ;;  %91 = vperm.xlu0 %724, %v49_v15   ;;  %v175_v33 = vld [vmem:[%s1019_s2 + $0x70] sm:$0xff]  ;;  %v305_v35 = vld [vmem:[%s1021_s4] sm:$0xff]  ;;  %v308_v36 = vld [vmem:[%s1021_s4 + $0x18] sm:$0xff] }
  0x1e   :  { %v307_v37 = vld [vmem:[%s1021_s4 + $0x10] sm:$0xff]  ;;  %v726_v38 = vld [vmem:[%s1020_s3] sm:$0xff]   ;;  %v310_v39 = vld [vmem:[%s1021_s4 + $0x28] sm:$0xff] }
  0x1f   :  { %v309_v40 = vld [vmem:[%s1021_s4 + $0x20] sm:$0xff]  ;;  %692 = vmatprep.mubr.bf16.mxu0 %v726_v38  ;;  %v312_v41 = vld [vmem:[%s1021_s4 + $0x38] sm:$0xff]  ;;  %v311_v42 = vld [vmem:[%s1021_s4 + $0x30] sm:$0xff] }
  0x20   :  { %v459_v43 = vld [vmem:[%s1023_s6 + $0x8] sm:$0xff]  ;;  %v458_v44 = vld [vmem:[%s1023_s6] sm:$0xff]  ;;  %v461_v45 = vld [vmem:[%s1023_s6 + $0x18] sm:$0xff] }
  0x21   :  { %214 = vperm.xlu1 %725, %v168_v16   ;;  %209 = vperm.xlu0 %724, %v167_v17   ;;  %v460_v46 = vld [vmem:[%s1023_s6 + $0x10] sm:$0xff]  ;;  %v606_v47 = vld [vmem:[%s1026_s9] sm:$0xff] }
  0x22   :  { %v555_v48 = vld [vmem:[%s1025_s8] sm:$0xff] }
  0x23   :  { %v619_v49 = vld [vmem:[#allocation2] sm:$0x1] }
  0x24   :  { %v967_v50 = vld [vmem:[%s1017_s0] ss:$0 sm:$0xff] }
  0x25   :  { %106 = vperm.xlu1 %725, %v52_v18   ;;  %101 = vperm.xlu0 %724, %v51_v19  }
  0x29   :  { %224 = vperm.xlu1 %725, %v170_v20   ;;  %219 = vperm.xlu0 %724, %v169_v21  }
  0x2d   :  { %116 = vperm.xlu1 %725, %v54_v22   ;;  %111 = vperm.xlu0 %724, %v53_v23  }
  0x31   :  { %234 = vperm.xlu1 %725, %v172_v24   ;;  %229 = vperm.xlu0 %724, %v171_v25  }
  0x35   :  { %126 = vperm.xlu1 %725, %v56_v26   ;;  %121 = vperm.xlu0 %724, %v55_v27  }
  0x39   :  { %244 = vperm.xlu1 %725, %v174_v28   ;;  %239 = vperm.xlu0 %724, %v173_v29  }
  0x3d   :  { %136 = vperm.xlu1 %725, %v58_v30   ;;  %131 = vperm.xlu0 %724, %v57_v31  }
  0x41   :  { %254 = vperm.xlu1 %725, %v176_v32   ;;  %249 = vperm.xlu0 %724, %v175_v33  }
  0x45   :  { %320 = vperm.xlu1 %725, %v306_v34   ;;  %315 = vperm.xlu0 %724, %v305_v35  }
  0x49   :  { %330 = vperm.xlu1 %725, %v308_v36   ;;  %325 = vperm.xlu0 %724, %v307_v37  }
  0x4d   :  { %340 = vperm.xlu1 %725, %v310_v39   ;;  %335 = vperm.xlu0 %724, %v309_v40  }
  0x51   :  { %350 = vperm.xlu1 %725, %v312_v41   ;;  %345 = vperm.xlu0 %724, %v311_v42  }
  0x55   :  { %469 = vperm.xlu1 %725, %v459_v43   ;;  %464 = vperm.xlu0 %724, %v458_v44  }
  0x59   :  { %479 = vperm.xlu1 %725, %v461_v45   ;;  %474 = vperm.xlu0 %724, %v460_v46  }
  0x5d   :  { %609 = vperm.xlu1 %725, %v606_v47   ;;  %558 = vperm.xlu0 %724, %v555_v48  }
  0x61   :  { %622 = vperm.xlu0 %724, %v619_v49  }
  0x84   :  { %v180_v51 = vpop.permute.xlu1 %179  ;;  %v62_v52 = vpop.permute.xlu0 %61 }
  0x85   :  { %v145_v53 = vmul.f32 %v967_v50, %v62_v52 }
  0x87   :  { %v257_v56 = vadd.f32 %v180_v51, %v145_v53 }
  0x88   :  { %v185_v54 = vpop.permute.xlu1 %184  ;;  %v67_v55 = vpop.permute.xlu0 %66 }
  0x89   :  { %v146_v57 = vmul.f32 %v967_v50, %v67_v55  ;;  %v273_v61 = vmax.f32 %v257_v56, 0.0 }
  0x8b   :  { %v258_v58 = vadd.f32 %v185_v54, %v146_v57 }
  0x8c   :  { %v77_v59 = vpop.permute.xlu1 %76  ;;  %v72_v60 = vpop.permute.xlu0 %71 }
  0x8d   :  { %v274_v62 = vmax.f32 %v258_v58, 0.0  ;;  %v148_v63 = vmul.f32 %v967_v50, %v77_v59  ;;  %v147_v0 = vmul.f32 %v967_v50, %v72_v60 }
  0x8f   :  { %v297_v1 = vpack.c.bf16 %v274_v62, %v273_v61 }
  0x90   :  { %v195_v2 = vpop.permute.xlu1 %194  ;;  %v190_v3 = vpop.permute.xlu0 %189 }
  0x91   :  { %v260_v4 = vadd.f32 %v195_v2, %v148_v63  ;;  %v259_v5 = vadd.f32 %v190_v3, %v147_v0  ;;  %676 = vmatprep.subr.bf16.mxu0 %v297_v1 }
  0x92   :  { %677 = vmatpush3.bf16.msra.mxu0 %v297_v1 }
  0x93   :  { %v276_v6 = vmax.f32 %v260_v4, 0.0  ;;  %v275_v7 = vmax.f32 %v259_v5, 0.0 }
  0x94   :  { %v87_v8 = vpop.permute.xlu1 %86  ;;  %v82_v9 = vpop.permute.xlu0 %81 }
  0x95   :  { %v298_v10 = vpack.c.bf16 %v276_v6, %v275_v7  ;;  %v150_v11 = vmul.f32 %v967_v50, %v87_v8  ;;  %v149_v12 = vmul.f32 %v967_v50, %v82_v9 }
  0x97   :  { %678 = vmatprep.subr.bf16.mxu0 %v298_v10 }
  0x98   :  { %v205_v13 = vpop.permute.xlu1 %204  ;;  %v200_v14 = vpop.permute.xlu0 %199  ;;  %679 = vmatpush3.bf16.msra.mxu0 %v298_v10 }
  0x99   :  { %v262_v15 = vadd.f32 %v205_v13, %v150_v11  ;;  %v261_v16 = vadd.f32 %v200_v14, %v149_v12  ;;  %v727_v12 = vld [vmem:[%s1020_s3 + $0x8] sm:$0xff]   ;;  %v728_v13 = vld [vmem:[%s1020_s3 + $0x10] sm:$0xff]   ;;  %v730_v14 = vld [vmem:[%s1022_s5] sm:$0xff]  }
  0x9a   :  { %708 = vmatprep.mubr.msk.bf16.mxu1 %vm492_vm0, %v730_v14 }
  0x9b   :  { %v278_v17 = vmax.f32 %v262_v15, 0.0  ;;  %v277_v18 = vmax.f32 %v261_v16, 0.0 }
  0x9c   :  { %v97_v19 = vpop.permute.xlu1 %96  ;;  %v92_v20 = vpop.permute.xlu0 %91 }
  0x9d   :  { %v299_v21 = vpack.c.bf16 %v278_v17, %v277_v18  ;;  %v152_v22 = vmul.f32 %v967_v50, %v97_v19  ;;  %v151_v23 = vmul.f32 %v967_v50, %v92_v20 }
  0x9f   :  { %680 = vmatprep.subr.bf16.mxu0 %v299_v21 }
  0xa0   :  { %v215_v24 = vpop.permute.xlu1 %214  ;;  %v210_v25 = vpop.permute.xlu0 %209  ;;  %681 = vmatpush3.bf16.msra.mxu0 %v299_v21 }
  0xa1   :  { %v264_v26 = vadd.f32 %v215_v24, %v152_v22  ;;  %v263_v27 = vadd.f32 %v210_v25, %v151_v23 }
  0xa3   :  { %v280_v28 = vmax.f32 %v264_v26, 0.0  ;;  %v279_v29 = vmax.f32 %v263_v27, 0.0 }
  0xa4   :  { %v107_v30 = vpop.permute.xlu1 %106  ;;  %v102_v31 = vpop.permute.xlu0 %101 }
  0xa5   :  { %v300_v32 = vpack.c.bf16 %v280_v28, %v279_v29  ;;  %v154_v33 = vmul.f32 %v967_v50, %v107_v30  ;;  %v153_v34 = vmul.f32 %v967_v50, %v102_v31 }
  0xa7   :  { %682 = vmatprep.subr.bf16.mxu0 %v300_v32 }
  0xa8   :  { %v225_v35 = vpop.permute.xlu1 %224  ;;  %v220_v36 = vpop.permute.xlu0 %219  ;;  %683 = vmatpush3.bf16.msra.mxu0 %v300_v32 }
  0xa9   :  { %v266_v37 = vadd.f32 %v225_v35, %v154_v33  ;;  %v265_v38 = vadd.f32 %v220_v36, %v153_v34 }
  0xab   :  { %v282_v39 = vmax.f32 %v266_v37, 0.0  ;;  %v281_v40 = vmax.f32 %v265_v38, 0.0 }
  0xac   :  { %v117_v41 = vpop.permute.xlu1 %116  ;;  %v112_v42 = vpop.permute.xlu0 %111 }
  0xad   :  { %v301_v43 = vpack.c.bf16 %v282_v39, %v281_v40  ;;  %v156_v44 = vmul.f32 %v967_v50, %v117_v41  ;;  %v155_v45 = vmul.f32 %v967_v50, %v112_v42 }
  0xaf   :  { %684 = vmatprep.subr.bf16.mxu0 %v301_v43 }
  0xb0   :  { %v235_v46 = vpop.permute.xlu1 %234  ;;  %v230_v47 = vpop.permute.xlu0 %229  ;;  %685 = vmatpush3.bf16.msra.mxu0 %v301_v43 }
  0xb1   :  { %v268_v48 = vadd.f32 %v235_v46, %v156_v44  ;;  %v267_v49 = vadd.f32 %v230_v47, %v155_v45 }
  0xb3   :  { %v284_v51 = vmax.f32 %v268_v48, 0.0  ;;  %v283_v52 = vmax.f32 %v267_v49, 0.0 }
  0xb4   :  { %v127_v53 = vpop.permute.xlu1 %126  ;;  %v122_v54 = vpop.permute.xlu0 %121 }
  0xb5   :  { %v302_v55 = vpack.c.bf16 %v284_v51, %v283_v52  ;;  %v158_v56 = vmul.f32 %v967_v50, %v127_v53  ;;  %v157_v57 = vmul.f32 %v967_v50, %v122_v54  ;;  %v731_v52 = vld [vmem:[%s1022_s5 + $0x8] sm:$0xff]   ;;  %v757_v53 = vmov 0.0  }
  0xb7   :  { %686 = vmatprep.subr.bf16.mxu0 %v302_v55 }
  0xb8   :  { %v245_v58 = vpop.permute.xlu1 %244  ;;  %v240_v59 = vpop.permute.xlu0 %239  ;;  %687 = vmatpush3.bf16.msra.mxu0 %v302_v55 }
  0xb9   :  { %v270_v60 = vadd.f32 %v245_v58, %v158_v56  ;;  %v269_v61 = vadd.f32 %v240_v59, %v157_v57 }
  0xbb   :  { %v286_v62 = vmax.f32 %v270_v60, 0.0  ;;  %v285_v63 = vmax.f32 %v269_v61, 0.0 }
  0xbc   :  { %v137_v0 = vpop.permute.xlu1 %136  ;;  %v132_v1 = vpop.permute.xlu0 %131 }
  0xbd   :  { %v303_v2 = vpack.c.bf16 %v286_v62, %v285_v63  ;;  %v160_v3 = vmul.f32 %v967_v50, %v137_v0  ;;  %v159_v4 = vmul.f32 %v967_v50, %v132_v1  ;;  %v729_v50 = vld [vmem:[%s1020_s3 + $0x18] sm:$0xff]  }
  0xbf   :  { %688 = vmatprep.subr.bf16.mxu0 %v303_v2 }
  0xc0   :  { %v255_v5 = vpop.permute.xlu1 %254  ;;  %v250_v6 = vpop.permute.xlu0 %249  ;;  %689 = vmatpush3.bf16.msra.mxu0 %v303_v2 }
  0xc1   :  { %v272_v7 = vadd.f32 %v255_v5, %v160_v3  ;;  %v271_v8 = vadd.f32 %v250_v6, %v159_v4 }
  0xc3   :  { %v288_v9 = vmax.f32 %v272_v7, 0.0  ;;  %v287_v10 = vmax.f32 %v271_v8, 0.0  ;;  %v552_v8 = vld [vmem:[%s1024_s7] sm:$0xf]  ;;  %s759_s7 = smov [#allocation3]  }
  0xc4   :  { %v316_v15 = vpop.permute.xlu0 %315  ;;  %v321_v16 = vpop.permute.xlu1 %320  ;;  %s637_s16 = sshll.u32 %s759_s7, 4  ;;  %s638_s16 = int_to_ptr.vmem [resolvable:$true] %s637_s16 }
  0xc5   :  { %v304_v11 = vpack.c.bf16 %v288_v9, %v287_v10  ;;  %s732_s17 = scalar_lea.vmem %s638_s16, 16  ;;  %s736_s18 = scalar_lea.vmem %s638_s16, 32 }
  0xc6   :  { %p733_p0 = scmp.ne.s32.totalorder %s638_s16, %s732_s17  ;;  %p737_p1 = scmp.lt.s32.totalorder %s638_s16, %s638_s16 }
  0xc7   :  { %690 = vmatprep.subr.bf16.mxu0 %v304_v11  ;;  %p738_p2 = scmp.lt.s32.totalorder %s736_s18, %s732_s17 }
  0xc8   :  { %691 = vmatpush3.bf16.msra.mxu0 %v304_v11  ;;  %v326_v17 = vpop.permute.xlu0 %325  ;;  %v331_v18 = vpop.permute.xlu1 %330 }
  0xc9   :  { %p739_p3 = por %p738_p2, %p737_p1 }
  0xcb   :  { %693 = vmatmul.mubr.bf16.vlgmr.msra.gmra.mrb[0].mxu0 %v727_v12  ;;  %p740_p4 = pnand %p739_p3, %p733_p0 }
  0xcc   :  { %696 = vmatprep.mubr.bf16.mxu0 %v728_v13  ;;  %v336_v22 = vpop.permute.xlu0 %335  ;;  %v341_v27 = vpop.permute.xlu1 %340 }
  0xd0   :  { %v346_v34 = vpop.permute.xlu0 %345  ;;  %v351_v39 = vpop.permute.xlu1 %350 }
  0xd3   :  { %697 = vmatmul.mubr.bf16.gmra.mrb[4].mxu0 %v729_v50 }
  0xd4   :  { %v465_v54 = vpop.permute.xlu0 %464  ;;  %v470_v55 = vpop.permute.xlu1 %469 }
  0xd8   :  { %v475_v56 = vpop.permute.xlu0 %474  ;;  %v480_v60 = vpop.permute.xlu1 %479 }
  0xdc   :  { %v559_v9 = vpop.permute.xlu0 %558 }
 0x19e   :  { %v694_v19 = vpop.f32.mrb[0].mxu0 }
 0x19f   :  { %v420_v20 = vadd.f32 %v694_v19, %v326_v17  ;;  %v411_v21 = vpop.f32.mrb[1].mxu0 }
 0x1a0   :  { %v412_v23 = vadd.f32 %v411_v21, %v316_v15  ;;  %v695_v24 = vpop.f32.mrb[2].mxu0  ;;  %v610_v15 = vpop.permute.xlu1 %609 }
 0x1a1   :  { %v423_v25 = vadd.f32 %v695_v24, %v331_v18  ;;  %v414_v26 = vpop.f32.mrb[3].mxu0  ;;  %v444_v29 = vmax.f32 %v420_v20, 0.0  ;;  %v623_v24 = vpop.permute.xlu0 %622 }
 0x1a2   :  { %v415_v28 = vadd.f32 %v414_v26, %v321_v16  ;;  %v442_v31 = vmax.f32 %v412_v23, 0.0  ;;  %v625_v16 = vlaneseq }
 0x1a3   :  { %v445_v30 = vmax.f32 %v423_v25, 0.0 }
 0x1a4   :  { %v443_v32 = vmax.f32 %v415_v28, 0.0  ;;  %v626_v19 = vshrl.u32 %v625_v16, 7 }
 0x1a5   :  { %v455_v33 = vpack.c.bf16 %v445_v30, %v444_v29 }
 0x1a6   :  { %v698_v35 = vpop.f32.mrb[4].mxu0  ;;  %v454_v36 = vpack.c.bf16 %v443_v32, %v442_v31 }
 0x1a7   :  { %v436_v37 = vadd.f32 %v698_v35, %v346_v34  ;;  %v427_v38 = vpop.f32.mrb[5].mxu0 }
 0x1a8   :  { %v428_v40 = vadd.f32 %v427_v38, %v336_v22  ;;  %v699_v41 = vpop.f32.mrb[6].mxu0  ;;  %700 = vmatprep.subr.bf16.mxu1 %v454_v36  ;;  %v627_v22 = vsub.s32 0, %v626_v19 }
 0x1a9   :  { %v439_v42 = vadd.f32 %v699_v41, %v351_v39  ;;  %v430_v43 = vpop.f32.mrb[7].mxu0  ;;  %701 = vmatpush3.bf16.msra.mxu1 %v454_v36  ;;  %v448_v45 = vmax.f32 %v436_v37, 0.0 }
 0x1aa   :  { %v431_v44 = vadd.f32 %v430_v43, %v341_v27  ;;  %702 = vmatprep.subr.bf16.mxu1 %v455_v33  ;;  %v446_v47 = vmax.f32 %v428_v40, 0.0  ;;  %v628_v26 = vrot.slane %v623_v24, %v627_v22 }
 0x1ab   :  { %v449_v46 = vmax.f32 %v439_v42, 0.0 }
 0x1ac   :  { %v447_v48 = vmax.f32 %v431_v44, 0.0 }
 0x1ad   :  { %v457_v49 = vpack.c.bf16 %v449_v46, %v448_v45  ;;  %703 = vmatpush3.bf16.msra.mxu1 %v455_v33 }
 0x1ae   :  { %v456_v51 = vpack.c.bf16 %v447_v48, %v446_v47 }
 0x1b0   :  { %704 = vmatprep.subr.bf16.mxu1 %v456_v51 }
 0x1b1   :  { %705 = vmatpush3.bf16.msra.mxu1 %v456_v51 }
 0x1b2   :  { %706 = vmatprep.subr.bf16.mxu1 %v457_v49 }
 0x1b5   :  { %707 = vmatpush3.bf16.msra.mxu1 %v457_v49 }
 0x1b6   :  { %712 = vmatprep.subr.bf16.mxu1 %v757_v53 }
 0x1b8   :  { %709 = vmatmul.mubr.msk.bf16.vlgmr.msra.gmra.mrb[0].mxu1 %vm492_vm0, %v731_v52 }
 0x1b9   :  { %716 = vmatprep.mubr.msk.bf16.mxu1 %vm758_vm1, %v757_v53 }
 0x28b   :  { %v710_v57 = vpop.f32.mrb[0].mxu1 }
 0x28c   :  { %v542_v58 = vadd.f32 %v710_v57, %v475_v56  ;;  %v533_v59 = vpop.f32.mrb[1].mxu1 }
 0x28d   :  { %v534_v61 = vadd.f32 %v533_v59, %v465_v54  ;;  %v711_v62 = vpop.f32.mrb[2].mxu1 }
 0x28e   :  { %v545_v63 = vadd.f32 %v711_v62, %v480_v60  ;;  %v536_v0 = vpop.f32.mrb[3].mxu1  ;;  %v550_v2 = vmax.f32 %v542_v58, 0.0 }
 0x28f   :  { %v537_v1 = vadd.f32 %v536_v0, %v470_v55  ;;  %v548_v4 = vmax.f32 %v534_v61, 0.0 }
 0x290   :  { %v551_v3 = vmax.f32 %v545_v63, 0.0 }
 0x291   :  { %v549_v5 = vmax.f32 %v537_v1, 0.0 }
 0x292   :  { %v554_v6 = vpack.c.bf16 %v551_v3, %v550_v2 }
 0x293   :  { %v553_v7 = vpack.c.bf16 %v549_v5, %v548_v4 }
 0x295   :  { %713 = vmatpush3.bf16.msra.mxu1 %v553_v7 }
 0x296   :  { %714 = vmatprep.subr.bf16.mxu1 %v757_v53 }
 0x299   :  { %715 = vmatpush3.bf16.msra.mxu1 %v554_v6 }
 0x29c   :  { %717 = vmatmul.mubr.msk.bf16.vlgmr.msra.gmra.mrb[4].mxu1 %vm561_vm2, %v552_v8 }
 0x36f   :  { %v599_v10 = vpop.f32.mrb[4].mxu1 }
 0x370   :  { %v600_v11 = vadd.f32 %v599_v10, %v559_v9  ;;  %v718_v12 = vpop.f32.mrb[5].mxu1 }
 0x371   :  { %v602_v13 = vpop.f32.mrb[6].mxu1 }
 0x372   :  { %v605_v50 = vmax.f32 %v600_v11, 0.0  ;;  %v719_v14 = vpop.f32.mrb[7].mxu1 }
 0x374   :  { %v612_v17 = vmul.f32 %v610_v15, %v605_v50 }
 0x376   :  { %v613_v18 = vrot.slane %v612_v17, 4 }
 0x378   :  { %v614_v20 = vadd.f32 %v613_v18, %v612_v17 }
 0x37a   :  { %v615_v21 = vrot.slane %v614_v20, 2 }
 0x37c   :  { %v616_v23 = vadd.f32 %v615_v21, %v614_v20 }
 0x37e   :  { %v617_v25 = vrot.slane %v616_v23, 1 }
 0x380   :  { %v618_v27 = vadd.f32 %v617_v25, %v616_v23 }
 0x382   :  { %v629_v28 = vadd.f32 %v628_v26, %v618_v27 }
 0x384   :  { %630 = vst [vmem:[#allocation3] sm:$0x1] %v629_v28 }
 0x385   :  { %743 = shalt.err (!%p740_p4)
}
 0x386   :  { %s744_s21 = scalar_lea.hbm %s1028_s11, 16 }
 0x387   :  { %p745_p5 = scmp.ne.s32.totalorder %s1028_s11, %s744_s21  ;;  %p748_p6 = scmp.lt.u32.totalorder %s744_s21, %s1028_s11 }
 0x389   :  { %p750_p7 = pnand %p748_p6, %p745_p5 }
 0x38b   :  { %753 = shalt.err (!%p750_p7)
}
 0x38c   :  { %640 = dma.vmem_to_hbm [thread:$0]  %s638_s16, 16, %s1028_s11, [#allocation4]  }
 0x38d   :  { %754 = dma.done.wait [#allocation4], 16  }
 0x38e   :  { %755 = vsyncadd [#allocation4], 4294967280 }
 0x38f   :  { %644 = vsyncpa [#allocation4], 1 }

</bundles_post_ra>
